<compile_context>
chip_gen: v7x
topology: tpu7x:2x2x1
jax: 0.10.0
libtpu: 0.0.40
codegen_flags: <defaults>
</compile_context>

<pallas_src>
import math
from functools import partial

import jax
import jax.numpy as jnp
from jax.experimental import pallas as pl
from jax.experimental.pallas import tpu as pltpu

_BN_EPS = 1e-5


def _round_up(x, m):
    return ((x + m - 1) // m) * m


def _default_vmem_limit():
    # ~3/4 of physical VMEM: 48 MiB on v7x (64 MiB), 96 MiB on v5e/v6e (128 MiB).
    try:
        cap = int(pltpu.get_tpu_info().vmem_capacity_bytes)
        return min((cap * 3) // 4, 96 * 1024 * 1024)
    except Exception:
        return 48 * 1024 * 1024


_VMEM_LIMIT = _default_vmem_limit()


# ---------------------------------------------------------------------------
# Pallas kernel 1: matmul + bias + optional ReLU.
#   * single-K-tile variant (the common case here): no scratch, bias added inline.
#   * K-tiled variant: f32 VMEM accumulator, bias folded into the k==0 init.
# ---------------------------------------------------------------------------
def _mm_kernel_nok(x_ref, w_ref, b_ref, o_ref, *, act):
    r = jnp.dot(x_ref[...], w_ref[...], preferred_element_type=jnp.float32) + b_ref[...]
    if act:
        r = jnp.maximum(r, 0.0)
    o_ref[...] = r.astype(o_ref.dtype)


def _mm_kernel_acc(x_ref, w_ref, b_ref, o_ref, acc_ref, *, act):
    @pl.when(pl.program_id(2) == 0)
    def _():
        acc_ref[...] = jnp.broadcast_to(b_ref[...], acc_ref.shape)

    acc_ref[...] += jnp.dot(x_ref[...], w_ref[...], preferred_element_type=jnp.float32)

    @pl.when(pl.program_id(2) == pl.num_programs(2) - 1)
    def _():
        r = acc_ref[...]
        if act:
            r = jnp.maximum(r, 0.0)
        o_ref[...] = r.astype(o_ref.dtype)


@partial(jax.jit, static_argnames=("act", "out_dtype"))
def pallas_matmul(x, w, b, *, act, out_dtype=jnp.bfloat16):
    """O = act(x @ w + b).  x:(M,K)  w:(K,N) bf16  b:(N,) f32."""
    M, K = x.shape
    Kw, N = w.shape
    assert K == Kw

    xb = x.astype(jnp.bfloat16)
    wb = w.astype(jnp.bfloat16)
    bf = b.astype(jnp.float32).reshape(1, N)

    # --- M tiling: only the large stem matmuls get tiled / padded (256-aligned tiles). ---
    if M > 768:
        TM = 256
        Mp = _round_up(M, TM)
        if Mp != M:
            xb = jnp.pad(xb, ((0, Mp - M), (0, 0)))
    else:
        TM = Mp = M
    m_tiles = Mp // TM

    # --- K: full-K blocks (every K in this net fits VMEM comfortably). ---
    if K > 4096 and K % 128 == 0:
        TK = 512 if K % 512 == 0 else (256 if K % 256 == 0 else 128)
    else:
        TK = K
    k_tiles = K // TK

    # --- N: split into >=2 parallel tiles (megacore) when lane-aligned and M is a single
    #     tile; otherwise keep the full (possibly unaligned) N -> no runtime weight pad. ---
    TN = N
    if N % 128 == 0:
        if m_tiles == 1 and N >= 256:
            for t in (512, 256, 128):
                if N % t == 0 and N // t >= 2:
                    TN = t
                    break
        elif N > 1024:
            for t in (1024, 512, 256, 128):
                if N % t == 0:
                    TN = t
                    break
    n_tiles = N // TN

    if k_tiles == 1:
        out = pl.pallas_call(
            partial(_mm_kernel_nok, act=act),
            out_shape=jax.ShapeDtypeStruct((Mp, N), out_dtype),
            grid_spec=pltpu.PrefetchScalarGridSpec(
                num_scalar_prefetch=0,
                grid=(m_tiles, n_tiles),
                in_specs=[
                    pl.BlockSpec((TM, K), lambda i, j: (i, 0)),
                    pl.BlockSpec((K, TN), lambda i, j: (0, j)),
                    pl.BlockSpec((1, TN), lambda i, j: (0, j)),
                ],
                out_specs=pl.BlockSpec((TM, TN), lambda i, j: (i, j)),
            ),
            compiler_params=pltpu.CompilerParams(
                dimension_semantics=("parallel", "parallel"),
                vmem_limit_bytes=_VMEM_LIMIT,
            ),
        )(xb, wb, bf)
    else:
        out = pl.pallas_call(
            partial(_mm_kernel_acc, act=act),
            out_shape=jax.ShapeDtypeStruct((Mp, N), out_dtype),
            grid_spec=pltpu.PrefetchScalarGridSpec(
                num_scalar_prefetch=0,
                grid=(m_tiles, n_tiles, k_tiles),
                in_specs=[
                    pl.BlockSpec((TM, TK), lambda i, j, k: (i, k)),
                    pl.BlockSpec((TK, TN), lambda i, j, k: (k, j)),
                    pl.BlockSpec((1, TN), lambda i, j, k: (0, j)),
                ],
                out_specs=pl.BlockSpec((TM, TN), lambda i, j, k: (i, j)),
                scratch_shapes=[pltpu.VMEM((TM, TN), jnp.float32)],
            ),
            compiler_params=pltpu.CompilerParams(
                dimension_semantics=("parallel", "parallel", "arbitrary"),
                vmem_limit_bytes=_VMEM_LIMIT,
            ),
        )(xb, wb, bf)

    if Mp != M:
        out = out[:M]
    return out


# ---------------------------------------------------------------------------
# CBA = Conv + BN(pre-folded) + optional ReLU, via im2col + pallas_matmul.
# ---------------------------------------------------------------------------
@partial(jax.jit, static_argnames=("stride", "pad", "act"))
def conv_bn_act(x, w, shift, *, stride, pad, act):
    """x:(B,H,W,Cin) NHWC bf16; w:(kh,kw,Cin,Cout) bf16 (BN folded); shift:(Cout,) f32."""
    x = x.astype(jnp.bfloat16)
    B, H, W, Cin = x.shape
    kh, kw, _, Cout = w.shape
    ph, pw = pad
    s = stride
    if ph or pw:
        x = jnp.pad(x, ((0, 0), (ph, ph), (pw, pw), (0, 0)))
    Hp, Wp = H + 2 * ph, W + 2 * pw
    Ho = (Hp - kh) // s + 1
    Wo = (Wp - kw) // s + 1
    # TODO(synk): im2col glue (see module header) -- tap-accumulation conv not implemented.
    cols = []
    for i in range(kh):
        for j in range(kw):
            cols.append(x[:, i:i + s * (Ho - 1) + 1:s, j:j + s * (Wo - 1) + 1:s, :])
    patches = cols[0] if len(cols) == 1 else jnp.concatenate(cols, axis=-1)
    xm = patches.reshape(B * Ho * Wo, kh * kw * Cin)
    wm = w.reshape(kh * kw * Cin, Cout)
    out = pallas_matmul(xm, wm, shift, act=act, out_dtype=jnp.bfloat16)
    return out.reshape(B, Ho, Wo, Cout)


def run_cba(x, p, stride=1, padding="same", act=True):
    kh, kw = p["w"].shape[0], p["w"].shape[1]
    pad = (kh // 2, kw // 2) if padding == "same" else (0, 0)
    return conv_bn_act(x, p["w"], p["shift"], stride=stride, pad=pad, act=act)


def run_entry_1x1(x, wm, shift, splits):
    """Fused branch-entry 1x1 convs (shared input): ONE matmul, then split outputs."""
    B, H, W, Cin = x.shape
    out = pallas_matmul(x.reshape(B * H * W, Cin), wm, shift, act=True)
    out = out.reshape(B, H, W, -1)
    outs, off = [], 0
    for sz in splits:
        outs.append(out[..., off:off + sz])
        off += sz
    return outs


# ---------------------------------------------------------------------------
# Pallas kernel 2: dense 3x3 max (bf16); the stride-2 subsample is cheap glue.
# ---------------------------------------------------------------------------
def _maxpool3_dense_kernel(x_ref, o_ref):
    Hd, Wd = o_ref.shape[1], o_ref.shape[2]
    x = x_ref[...]
    m = x[:, 0:Hd, 0:Wd, :]
    for i in range(3):
        for j in range(3):
            if i == 0 and j == 0:
                continue
            m = jnp.maximum(m, x[:, i:i + Hd, j:j + Wd, :])
    o_ref[...] = m


@jax.jit
def maxpool_3x3_s2(x):
    x = x.astype(jnp.bfloat16)
    B, H, W, C = x.shape
    Hd, Wd = H - 2, W - 2
    dense = pl.pallas_call(
        _maxpool3_dense_kernel,
        out_shape=jax.ShapeDtypeStruct((B, Hd, Wd, C), x.dtype),
        in_specs=[pl.BlockSpec(memory_space=pltpu.MemorySpace.VMEM)],
        out_specs=pl.BlockSpec(memory_space=pltpu.MemorySpace.VMEM),
        compiler_params=pltpu.CompilerParams(vmem_limit_bytes=_VMEM_LIMIT),
    )(x)
    return dense[:, ::2, ::2, :]


# ---------------------------------------------------------------------------
# Pallas kernel 3 (fused inception-block tail, batched over B*HW):
#   x1     = xcat @ Wl1 + shift                     (1x1 conv, BN folded, no act)
#   pooled = P @ x1                                  (per-sample GAP, averaging matrix)
#   y      = sigmoid(relu(pooled @ W1) @ W2)
#   out    = relu(x1 * (E @ y) + residual)           (E = row->sample indicator)
# Everything stays in VMEM; no HBM round-trip for x1.
# ---------------------------------------------------------------------------
def _l1_se_res_kernel(xc_ref, res_ref, wl1_ref, shift_ref, w1_ref, w2_ref,
                      p_ref, e_ref, o_ref):
    x1 = jnp.dot(xc_ref[...], wl1_ref[...],
                 preferred_element_type=jnp.float32) + shift_ref[...]        # (BHW, C)
    pooled = jnp.dot(p_ref[...], x1, preferred_element_type=jnp.float32)     # (B, C)
    h = jnp.maximum(
        jnp.dot(pooled.astype(jnp.bfloat16), w1_ref[...],
                preferred_element_type=jnp.float32), 0.0)
    z = jnp.dot(h.astype(jnp.bfloat16), w2_ref[...],
                preferred_element_type=jnp.float32)
    y = 1.0 / (1.0 + jnp.exp(-z))                                            # (B, C)
    y_rows = jnp.dot(e_ref[...], y, preferred_element_type=jnp.float32)      # (BHW, C)
    out = jnp.maximum(x1 * y_rows + res_ref[...].astype(jnp.float32), 0.0)
    o_ref[...] = out.astype(o_ref.dtype)


@jax.jit
def l1_se_residual(xc, res, wl1, shift, w1, w2):
    B, H, W, C = res.shape
    HW = H * W
    Ccat = xc.shape[-1]
    Ccatp = wl1.shape[0]  # wl1 rows pre-padded to a multiple of 128 at construction
    xc2 = xc.astype(jnp.bfloat16).reshape(B * HW, Ccat)
    if Ccatp != Ccat:
        xc2 = jnp.pad(xc2, ((0, 0), (0, Ccatp - Ccat)))
    res2 = res.astype(jnp.bfloat16).reshape(B * HW, C)
    # Per-sample GAP / gate-expansion constants (folded by XLA).
    pmat = jnp.kron(jnp.eye(B, dtype=jnp.float32),
                    jnp.full((1, HW), 1.0 / HW, jnp.float32))    # (B, B*HW)
    emat = jnp.kron(jnp.eye(B, dtype=jnp.float32),
                    jnp.ones((HW, 1), jnp.float32))              # (B*HW, B)
    out = pl.pallas_call(
        _l1_se_res_kernel,
        out_shape=jax.ShapeDtypeStruct((B * HW, C), jnp.bfloat16),
        in_specs=[pl.BlockSpec(memory_space=pltpu.MemorySpace.VMEM)] * 8,
        out_specs=pl.BlockSpec(memory_space=pltpu.MemorySpace.VMEM),
        compiler_params=pltpu.CompilerParams(vmem_limit_bytes=_VMEM_LIMIT),
    )(xc2, res2, wl1, shift.reshape(1, C).astype(jnp.float32), w1, w2, pmat, emat)
    return out.reshape(B, H, W, C)


# ---------------------------------------------------------------------------
# Deterministic parameter construction (mirrors the PyTorch __init__ shapes),
# with BN folding, bf16 pre-cast and entry-1x1 / l1 pre-fusion done here (ONCE).
# ---------------------------------------------------------------------------
class ParamGen:
    def __init__(self, key):
        self._key = key

    def _next(self):
        self._key, sub = jax.random.split(self._key)
        return sub

    def conv(self, kh, kw, cin, cout):
        # _init_weights: N(0, sqrt(2 / (kh*kw*cout)))
        std = math.sqrt(2.0 / (kh * kw * cout))
        w = jax.random.normal(self._next(), (kh, kw, cin, cout), jnp.float32) * std
        # BatchNorm (eval, default stats mean=0/var=1/gamma=1/beta=0) folded in.
        scale = 1.0 / math.sqrt(1.0 + _BN_EPS)
        return {"w": (w * scale).astype(jnp.bfloat16),
                "shift": jnp.zeros((cout,), jnp.float32)}

    def linear(self, cin, cout, bias=True):
        bound = 1.0 / math.sqrt(cin)
        w = jax.random.uniform(self._next(), (cin, cout), jnp.float32, -bound, bound)
        out = {"w": w.astype(jnp.bfloat16)}
        if bias:
            out["b"] = jax.random.uniform(self._next(), (cout,), jnp.float32,
                                          -bound, bound)
        return out


def _fuse_1x1(convs):
    """Concatenate the weights of several shared-input 1x1 CBAs along N (done once)."""
    wm = jnp.concatenate(
        [c["w"].reshape(c["w"].shape[2], c["w"].shape[3]) for c in convs], axis=1)
    shift = jnp.concatenate([c["shift"] for c in convs])
    return wm, shift


def _prep_l1(conv_p, ccat):
    """1x1 l1 conv of a block tail: (Ccat, C) bf16 weight, rows padded to 128-multiple."""
    ccatp = _round_up(ccat, 128)
    w = conv_p["w"].reshape(conv_p["w"].shape[2], conv_p["w"].shape[3])
    if ccatp != ccat:
        w = jnp.pad(w, ((0, ccatp - ccat), (0, 0)))
    return w, conv_p["shift"]


def make_stem(pg, in_c):
    ew, es = _fuse_1x1([pg.conv(1, 1, 160, 64), pg.conv(1, 1, 160, 64)])
    return {
        "m": [pg.conv(3, 3, in_c, 32), pg.conv(3, 3, 32, 32), pg.conv(3, 3, 32, 64)],
        "c96": pg.conv(3, 3, 64, 96),
        "entry_w": ew, "entry_shift": es,
        "m1b": pg.conv(3, 3, 64, 96),
        "m2b": pg.conv(7, 1, 64, 64),
        "m2c": pg.conv(1, 7, 64, 64),
        "m2d": pg.conv(3, 3, 64, 96),
        "c192": pg.conv(3, 3, 192, 192),
    }


@jax.jit
def run_stem(x, p):
    x = run_cba(x, p["m"][0], stride=2, padding="valid")
    x = run_cba(x, p["m"][1], stride=1, padding="valid")
    x = run_cba(x, p["m"][2], stride=1, padding="same")
    x = jnp.concatenate(
        [maxpool_3x3_s2(x), run_cba(x, p["c96"], stride=2, padding="valid")], axis=-1)
    e1, e2 = run_entry_1x1(x, p["entry_w"], p["entry_shift"], (64, 64))
    b1 = run_cba(e1, p["m1b"], padding="valid")
    b2 = run_cba(run_cba(run_cba(e2, p["m2b"]), p["m2c"]), p["m2d"], padding="valid")
    x = jnp.concatenate([b1, b2], axis=-1)
    x = jnp.concatenate(
        [run_cba(x, p["c192"], stride=2, padding="valid"), maxpool_3x3_s2(x)], axis=-1)
    return x


def make_incA(pg, in_c=384, reduction=16):
    ew, es = _fuse_1x1([pg.conv(1, 1, in_c, 32), pg.conv(1, 1, in_c, 32),
                        pg.conv(1, 1, in_c, 32)])
    l1w, l1s = _prep_l1(pg.conv(1, 1, 128, 384), 128)
    return {
        "entry_w": ew, "entry_shift": es,
        "m2b": pg.conv(3, 3, 32, 32),
        "m3b": pg.conv(3, 3, 32, 48), "m3c": pg.conv(3, 3, 48, 64),
        "l1_w": l1w, "l1_shift": l1s,
        "se1": pg.linear(384, 384 // reduction, bias=False)["w"],
        "se2": pg.linear(384 // reduction, 384, bias=False)["w"],
    }


@jax.jit
def run_incA(x, p):
    b1, e2, e3 = run_entry_1x1(x, p["entry_w"], p["entry_shift"], (32, 32, 32))
    b2 = run_cba(e2, p["m2b"])
    b3 = run_cba(run_cba(e3, p["m3b"]), p["m3c"])
    xc = jnp.concatenate([b1, b2, b3], axis=-1)
    return l1_se_residual(xc, x, p["l1_w"], p["l1_shift"], p["se1"], p["se2"])


def make_incB(pg, in_c=1152, reduction=16):
    ew, es = _fuse_1x1([pg.conv(1, 1, in_c, 192), pg.conv(1, 1, in_c, 128)])
    l1w, l1s = _prep_l1(pg.conv(1, 1, 384, in_c), 384)
    return {
        "entry_w": ew, "entry_shift": es,
        "m2b": pg.conv(1, 7, 128, 160), "m2c": pg.conv(7, 1, 160, 192),
        "l1_w": l1w, "l1_shift": l1s,
        "se1": pg.linear(in_c, in_c // reduction, bias=False)["w"],
        "se2": pg.linear(in_c // reduction, in_c, bias=False)["w"],
    }


@jax.jit
def run_incB(x, p):
    b1, e2 = run_entry_1x1(x, p["entry_w"], p["entry_shift"], (192, 128))
    b2 = run_cba(run_cba(e2, p["m2b"]), p["m2c"])
    xc = jnp.concatenate([b1, b2], axis=-1)
    return l1_se_residual(xc, x, p["l1_w"], p["l1_shift"], p["se1"], p["se2"])


def make_incC(pg, in_c=2144, reduction=16):
    ew, es = _fuse_1x1([pg.conv(1, 1, in_c, 192), pg.conv(1, 1, in_c, 192)])
    l1w, l1s = _prep_l1(pg.conv(1, 1, 448, in_c), 448)
    return {
        "entry_w": ew, "entry_shift": es,
        "m2b": pg.conv(1, 3, 192, 224), "m2c": pg.conv(3, 1, 224, 256),
        "l1_w": l1w, "l1_shift": l1s,
        "se1": pg.linear(in_c, in_c // reduction, bias=False)["w"],
        "se2": pg.linear(in_c // reduction, in_c, bias=False)["w"],
    }


@jax.jit
def run_incC(x, p):
    b1, e2 = run_entry_1x1(x, p["entry_w"], p["entry_shift"], (192, 192))
    b2 = run_cba(run_cba(e2, p["m2b"]), p["m2c"])
    xc = jnp.concatenate([b1, b2], axis=-1)
    return l1_se_residual(xc, x, p["l1_w"], p["l1_shift"], p["se1"], p["se2"])


def make_redA(pg, in_c=384):
    return {
        "m2": pg.conv(3, 3, in_c, 384),
        "m3": [pg.conv(1, 1, in_c, 256), pg.conv(3, 3, 256, 256), pg.conv(3, 3, 256, 384)],
    }


@jax.jit
def run_redA(x, p):
    a = maxpool_3x3_s2(x)
    b = run_cba(x, p["m2"], stride=2, padding="valid")
    c = run_cba(run_cba(run_cba(x, p["m3"][0]), p["m3"][1]),
                p["m3"][2], stride=2, padding="valid")
    return jnp.concatenate([a, b, c], axis=-1)


def make_redB(pg, in_c=1152):
    ew, es = _fuse_1x1([pg.conv(1, 1, in_c, 256), pg.conv(1, 1, in_c, 256),
                        pg.conv(1, 1, in_c, 256)])
    return {
        "entry_w": ew, "entry_shift": es,
        "m2b": pg.conv(3, 3, 256, 384),
        "m3b": pg.conv(3, 3, 256, 288),
        "m4b": pg.conv(3, 3, 256, 288), "m4c": pg.conv(3, 3, 288, 320),
    }


@jax.jit
def run_redB(x, p):
    a = maxpool_3x3_s2(x)
    e2, e3, e4 = run_entry_1x1(x, p["entry_w"], p["entry_shift"], (256, 256, 256))
    b = run_cba(e2, p["m2b"], stride=2, padding="valid")
    c = run_cba(e3, p["m3b"], stride=2, padding="valid")
    d = run_cba(run_cba(e4, p["m4b"]), p["m4c"], stride=2, padding="valid")
    return jnp.concatenate([a, b, c, d], axis=-1)


@jax.jit
def run_head(x, fc_w, fc_b):
    # AdaptiveAvgPool2d((1,1)) + Flatten (+ Dropout = identity in eval)
    pooled = jnp.mean(x.astype(jnp.float32), axis=(1, 2))
    return pallas_matmul(pooled, fc_w, fc_b, act=False, out_dtype=jnp.float32)


def make_model(key, in_c=3, num_classes=1000):
    pg = ParamGen(key)
    return {
        "stem": make_stem(pg, in_c),
        "A": [make_incA(pg) for _ in range(5)],
        "redA": make_redA(pg),
        "B": [make_incB(pg) for _ in range(10)],
        "redB": make_redB(pg),
        "C": [make_incC(pg) for _ in range(5)],
        "fc": pg.linear(2144, num_classes, bias=True),
    }


def se_inception_resnet_v2_forward(x_nchw, params):
    # NCHW (PyTorch) -> NHWC (kernel layout), bf16 activations.
    x = jnp.transpose(x_nchw, (0, 2, 3, 1)).astype(jnp.bfloat16)
    x = run_stem(x, params["stem"])
    for p in params["A"]:
        x = run_incA(x, p)
    x = run_redA(x, params["redA"])
    for p in params["B"]:
        x = run_incB(x, p)
    x = run_redB(x, params["redB"])
    for p in params["C"]:
        x = run_incC(x, p)
    return run_head(x, params["fc"]["w"], params["fc"]["b"])


if __name__ == "__main__":
    key = jax.random.PRNGKey(0)
    pkey, xkey = jax.random.split(key)
    # 75x75 is the minimum spatial size that survives the stem + both reductions.
    x = jax.random.normal(xkey, (2, 3, 75, 75), jnp.float32)   # NCHW like PyTorch
    params = make_model(pkey, in_c=3, num_classes=1000)
    out = se_inception_resnet_v2_forward(x, params)
    out = jax.block_until_ready(out)
    assert out.shape == (2, 1000), out.shape
    assert bool(jnp.all(jnp.isfinite(out)))
    print("KERNEL_OK")
</pallas_src>

<mosaic_0001>
module attributes {stable_mosaic.version = 11 : i64} {
  func.func @_mm_kernel_nok(%arg0: i32, %arg1: i32, %arg2: memref<256x27xbf16, #tpu.memory_space<vmem>>, %arg3: memref<27x32xbf16, #tpu.memory_space<vmem>>, %arg4: memref<1x32xf32, #tpu.memory_space<vmem>>, %arg5: memref<256x32xbf16, #tpu.memory_space<vmem>>) attributes {dimension_semantics = [#tpu.dimension_semantics<parallel>, #tpu.dimension_semantics<parallel>], iteration_bounds = array<i64: 11, 1>, scalar_prefetch = 0 : i64, scratch_operands = 0 : i64, tpu.core_type = #tpu.core_type<tc>, window_params = [{transform_indices = @transform_0, window_bounds = array<i64: 256, 27>}, {transform_indices = @transform_1, window_bounds = array<i64: 27, 32>}, {transform_indices = @transform_2, window_bounds = array<i64: 1, 32>}, {transform_indices = @transform_3, window_bounds = array<i64: 256, 32>}]} {
    %c0 = arith.constant 0 : index
    %c0_0 = arith.constant 0 : index
    %0 = vector.load %arg2[%c0, %c0_0] : memref<256x27xbf16, #tpu.memory_space<vmem>>, vector<256x27xbf16>
    %c0_1 = arith.constant 0 : index
    %c0_2 = arith.constant 0 : index
    %1 = vector.load %arg3[%c0_1, %c0_2] : memref<27x32xbf16, #tpu.memory_space<vmem>>, vector<27x32xbf16>
    %cst = arith.constant dense<0.000000e+00> : vector<256x32xf32>
    %2 = tpu.matmul %0, %1, %cst {dimension_numbers = #tpu.dot_dimension_numbers<[1], [0], [0], [1], [0, 0, 1, 1], [], []>} : vector<256x27xbf16>, vector<27x32xbf16>, vector<256x32xf32> -> vector<256x32xf32>
    %c0_3 = arith.constant 0 : index
    %c0_4 = arith.constant 0 : index
    %3 = vector.load %arg4[%c0_3, %c0_4] : memref<1x32xf32, #tpu.memory_space<vmem>>, vector<1x32xf32>
    %4 = vector.broadcast %3 : vector<1x32xf32> to vector<256x32xf32>
    %5 = arith.addf %2, %4 : vector<256x32xf32>
    %cst_5 = arith.constant 0.000000e+00 : f32
    %6 = vector.broadcast %cst_5 : f32 to vector<256x32xf32>
    %7 = arith.maximumf %5, %6 : vector<256x32xf32>
    %8 = arith.truncf %7 : vector<256x32xf32> to vector<256x32xbf16>
    %c0_6 = arith.constant 0 : index
    %c0_7 = arith.constant 0 : index
    %9 = vector.load %arg5[%c0_6, %c0_7] : memref<256x32xbf16, #tpu.memory_space<vmem>>, vector<256x32xbf16>
    tpu.vector_store %arg5[%c0_6, %c0_7], %8 {strides = array<i32>} : memref<256x32xbf16, #tpu.memory_space<vmem>>, vector<256x32xbf16>,
    return
  }
  func.func @transform_0(%arg0: i32, %arg1: i32) -> (i32, i32) {
    %c0_i32 = arith.constant 0 : i32
    %c0_i32_0 = arith.constant 0 : i32
    return %arg0, %c0_i32 : i32, i32
  }
  func.func @transform_1(%arg0: i32, %arg1: i32) -> (i32, i32) {
    %c0_i32 = arith.constant 0 : i32
    %c0_i32_0 = arith.constant 0 : i32
    return %c0_i32, %arg1 : i32, i32
  }
  func.func @transform_2(%arg0: i32, %arg1: i32) -> (i32, i32) {
    %c0_i32 = arith.constant 0 : i32
    %c0_i32_0 = arith.constant 0 : i32
    return %c0_i32, %arg1 : i32, i32
  }
  func.func @transform_3(%arg0: i32, %arg1: i32) -> (i32, i32) {
    %c0_i32 = arith.constant 0 : i32
    return %arg0, %arg1 : i32, i32
  }
}

</mosaic_0001>

<bundles_post_ra>
// kernel: pallas_matmul.1
= control target key start
LH: loop header
LB: loop body
LE: loop exit
PB: predicated region body
PF: predicated region fallthrough
CT: control target
= control target key end

     0   :  { %s1130_s12 = smov 0   ;;  %s1132_s13 = smov 0   ;;  %s1313_s0 = inlined_call_operand.vmem [shape: bf16[2816,27], index: 0, kind: input, shape index: {}]   ;;  %s1314_s1 = inlined_call_operand.vmem [shape: bf16[27,32], index: 1, kind: input, shape index: {}]   ;;  %s1315_s2 = inlined_call_operand.vmem [shape: f32[1,32], index: 2, kind: input, shape index: {}]   ;;  %s1316_s3 = inlined_call_operand.vmem [shape: bf16[2816,32], index: 3, kind: output, shape index: {}]  }
   0x1   :  { %s1134_s14 = smov 0  }
   0x2 LB: > { %s25_s15 = sadd.s32 1, %s1103_s13  ;;  %p878_p0 = scmp.ge.s32.totalorder %s1107_s14, 1  ;;  %s1107_s14 = sphi %s1134_s14, %s13_s14   ;;  %s1103_s13 = sphi %s1132_s13, %s1318_s13   ;;  %s1099_s12 = sphi %s1130_s12, %s1317_s12  }
   0x3   : > { %p27_p1 = scmp.ge.s32.totalorder %s25_s15, 11  ;;  %p169_p2 = scmp.lt.s32.totalorder %s1107_s14, 12 }
   0x5   : > { %s1320_s15 = smov (%p27_p1, %s25_s15), 0  ;;  %p170_p3 = pnand %p878_p0, %p169_p2 }
   0x6   : > { %v1067_v0 = vld [vmem:[%s1314_s1] sm:$0xff] (!%p170_p3)   ;;  %vm409_vm0 = vcmask (!%p170_p3), 1044480   ;;  %v1068_v1 = vld [vmem:[%s1314_s1 + $0x8] sm:$0x3f] (!%p170_p3)   ;;  %vm410_vm1 = vcmask (!%p170_p3), 1045504   ;;  %s879_s20 = sshll.u32 (!%p170_p3), %s1099_s12, 5 }
   0x7   : > { %173 = sbr.rel (%p170_p3) target bundleno = 266 (0x10a), region = 32  ;;  %1002 = vmatprep.subr.bf16.mxu0 (!%p170_p3), %v1067_v0  ;;  %1038 = vmatprep.subr.bf16.mxu1 (!%p170_p3), %v1067_v0  ;;  %v1109_v2 = vmov (!%p170_p3), 65535   ;;  %p204_p4 = scmp.lt.s32.totalorder (!%p170_p3), %s879_s20, 351  ;;  %vm360_vm2 = vcmask (!%p170_p3), 220160   ;;  %v1199_v22 = vld [vmem:[%s1315_s2] ss:$0 sm:$0xff] (!%p170_p3) }
   0x8   : > { %1003 = vmatpush3.bf16.msra.mxu0 (!%p170_p3), %v1067_v0  ;;  %1040 = vmatpush3.bf16.msra.mxu1 (!%p170_p3), %v1067_v0  ;;  %v411_v3 = vsel (!%p170_p3), %vm409_vm0, 4294967295, %v1109_v2  ;;  %vm737_vm3 = vcmask (!%p170_p3), 257024  }
   0x9   : > { %v412_v4 = vsel (!%p170_p3), %vm410_vm1, %v411_v3, 0 }
   0xa   : > { %v414_v5 = vand.u32 (!%p170_p3), %v1068_v1, %v412_v4 }
   0xc   : > { %1004 = vmatprep.subr.bf16.mxu0 (!%p170_p3), %v414_v5  ;;  %1039 = vmatprep.subr.bf16.mxu1 (!%p170_p3), %v414_v5 }
   0xd   : > { %1005 = vmatpush3.bf16.msra.mxu0 (!%p170_p3), %v414_v5  ;;  %1041 = vmatpush3.bf16.msra.mxu1 (!%p170_p3), %v414_v5 }
   0xe   : > { %s1322_s20 = smov (!%p204_p4, %s879_s20), 351 }
   0xf   : > { %s880_s21 = sshll.u32 %s1322_s20, 2 }
  0x10   : > { %s1162_s24 = scalar_lea.vmem %s1313_s0, %s880_s21  ;;  %s1211_s29 = scalar_lea.vmem %s1316_s3, %s880_s21 }
  0x11   : > { %v1069_v6 = vld [vmem:[%s1162_s24] sm:$0xff]   ;;  %v1071_v8 = vld [vmem:[%s1162_s24 + $0x8] sm:$0xff]   ;;  %v1073_v10 = vld [vmem:[%s1162_s24 + $0x10] sm:$0xff]  }
  0x12   : > { %v1070_v7 = vld [vmem:[%s1162_s24 + $0x40] sm:$0xff]   ;;  %1006 = vmatprep.mubr.msk.bf16.mxu0 %vm360_vm2, %v1069_v6  ;;  %v1072_v9 = vld [vmem:[%s1162_s24 + $0x48] sm:$0xff]   ;;  %v1074_v11 = vld [vmem:[%s1162_s24 + $0x50] sm:$0xff]  }
  0x13   : > { %1022 = vmatprep.mubr.msk.bf16.mxu1 %vm360_vm2, %v1070_v7  ;;  %1007 = vmatmul.mubr.msk.bf16.vlgmr.msra.gmra.mrb[0].mxu0 %vm360_vm2, %v1071_v8  ;;  %v1075_v12 = vld [vmem:[%s1162_s24 + $0x18] sm:$0xff]   ;;  %v1077_v14 = vld [vmem:[%s1162_s24 + $0x20] sm:$0xff]   ;;  %v1079_v16 = vld [vmem:[%s1162_s24 + $0x28] sm:$0xff]  }
  0x14   : > { %1023 = vmatmul.mubr.msk.bf16.vlgmr.msra.gmra.mrb[0].mxu1 %vm360_vm2, %v1072_v9  ;;  %1010 = vmatprep.mubr.msk.bf16.mxu0 %vm360_vm2, %v1073_v10  ;;  %v1076_v13 = vld [vmem:[%s1162_s24 + $0x58] sm:$0xff]   ;;  %v1078_v15 = vld [vmem:[%s1162_s24 + $0x60] sm:$0xff]   ;;  %v1080_v17 = vld [vmem:[%s1162_s24 + $0x68] sm:$0xff]  }
  0x15   : > { %1026 = vmatprep.mubr.msk.bf16.mxu1 %vm360_vm2, %v1074_v11  ;;  %v1081_v18 = vld [vmem:[%s1162_s24 + $0x30] sm:$0xff]   ;;  %v1083_v20 = vld [vmem:[%s1162_s24 + $0x38] sm:$0xff]  }
  0x16   : > { %v1082_v19 = vld [vmem:[%s1162_s24 + $0x70] sm:$0xff]   ;;  %v1084_v21 = vld [vmem:[%s1162_s24 + $0x78] sm:$0xff]  }
  0x1b   : > { %1011 = vmatmul.mubr.msk.bf16.gmra.mrb[4].mxu0 %vm360_vm2, %v1075_v12 }
  0x1c   : > { %1027 = vmatmul.mubr.msk.bf16.gmra.mrb[4].mxu1 %vm360_vm2, %v1076_v13  ;;  %1014 = vmatprep.mubr.msk.bf16.mxu0 %vm360_vm2, %v1077_v14 }
  0x1d   : > { %1030 = vmatprep.mubr.msk.bf16.mxu1 %vm360_vm2, %v1078_v15 }
  0x23   : > { %1015 = vmatmul.mubr.msk.bf16.gmra.mrb[8].mxu0 %vm360_vm2, %v1079_v16 }
  0x24   : > { %1031 = vmatmul.mubr.msk.bf16.gmra.mrb[8].mxu1 %vm360_vm2, %v1080_v17  ;;  %1018 = vmatprep.mubr.msk.bf16.mxu0 %vm360_vm2, %v1081_v18 }
  0x25   : > { %1034 = vmatprep.mubr.msk.bf16.mxu1 %vm360_vm2, %v1082_v19 }
  0x2b   : > { %1019 = vmatmul.mubr.msk.bf16.gmra.mrb[12].mxu0 %vm360_vm2, %v1083_v20 }
  0x2c   : > { %1035 = vmatmul.mubr.msk.bf16.gmra.mrb[12].mxu1 %vm360_vm2, %v1084_v21 }
  0xe6   : > { %v1008_v23 = vpop.f32.mrb[0].mxu0 }
  0xe7   : > { %v459_v24 = vadd.f32 %v1008_v23, %v1199_v22  ;;  %v1024_v25 = vpop.f32.mrb[0].mxu1  ;;  %v450_v26 = vpop.f32.mrb[1].mxu0 }
  0xe8   : > { %v523_v27 = vadd.f32 %v1024_v25, %v1199_v22  ;;  %v451_v28 = vadd.f32 %v1199_v22, %v450_v26  ;;  %v514_v29 = vpop.f32.mrb[1].mxu1  ;;  %v1009_v30 = vpop.f32.mrb[2].mxu0 }
  0xe9   : > { %v579_v31 = vmax.f32 %v459_v24, 0.0  ;;  %v515_v32 = vadd.f32 %v1199_v22, %v514_v29  ;;  %v462_v33 = vadd.f32 %v1009_v30, %v1199_v22  ;;  %v1025_v34 = vpop.f32.mrb[2].mxu1  ;;  %v453_v35 = vpop.f32.mrb[3].mxu0 }
  0xea   : > { %v595_v36 = vmax.f32 %v523_v27, 0.0  ;;  %v577_v37 = vmax.f32 %v451_v28, 0.0  ;;  %v526_v38 = vadd.f32 %v1025_v34, %v1199_v22  ;;  %v454_v39 = vadd.f32 %v1199_v22, %v453_v35  ;;  %v517_v40 = vpop.f32.mrb[3].mxu1 }
  0xeb   : > { %v954_v41 = vpack.c.bf16 %v579_v31, %v579_v31  ;;  %v593_v42 = vmax.f32 %v515_v32, 0.0  ;;  %v580_v43 = vmax.f32 %v462_v33, 0.0  ;;  %v518_v44 = vadd.f32 %v1199_v22, %v517_v40 }
  0xec   : > { %v970_v45 = vpack.c.bf16 %v595_v36, %v595_v36  ;;  %v952_v46 = vpack.c.bf16 %v577_v37, %v577_v37  ;;  %v596_v47 = vmax.f32 %v526_v38, 0.0  ;;  %v578_v48 = vmax.f32 %v454_v39, 0.0 }
  0xed   : > { %740 = vst.msk [vmem:[%s1211_s29 + $0x8] sm:$0xf] %vm737_vm3, %v954_v41  ;;  %v968_v49 = vpack.c.bf16 %v593_v42, %v593_v42  ;;  %v955_v50 = vpack.c.bf16 %v580_v43, %v580_v43  ;;  %v594_v51 = vmax.f32 %v518_v44, 0.0 }
  0xee   : > { %756 = vst.msk [vmem:[%s1211_s29 + $0x48] sm:$0xf] %vm737_vm3, %v970_v45  ;;  %738 = vst.msk [vmem:[%s1211_s29] sm:$0xf] %vm737_vm3, %v952_v46  ;;  %v971_v52 = vpack.c.bf16 %v596_v47, %v596_v47  ;;  %v953_v53 = vpack.c.bf16 %v578_v48, %v578_v48  ;;  %v1012_v54 = vpop.f32.mrb[4].mxu0 }
  0xef   : > { %754 = vst.msk [vmem:[%s1211_s29 + $0x40] sm:$0xf] %vm737_vm3, %v968_v49  ;;  %741 = vst.msk [vmem:[%s1211_s29 + $0xc] sm:$0xf] %vm737_vm3, %v955_v50  ;;  %v969_v55 = vpack.c.bf16 %v594_v51, %v594_v51  ;;  %v475_v56 = vadd.f32 %v1012_v54, %v1199_v22  ;;  %v1028_v57 = vpop.f32.mrb[4].mxu1  ;;  %v466_v58 = vpop.f32.mrb[5].mxu0 }
  0xf0   : > { %757 = vst.msk [vmem:[%s1211_s29 + $0x4c] sm:$0xf] %vm737_vm3, %v971_v52  ;;  %739 = vst.msk [vmem:[%s1211_s29 + $0x4] sm:$0xf] %vm737_vm3, %v953_v53  ;;  %v539_v59 = vadd.f32 %v1028_v57, %v1199_v22  ;;  %v467_v60 = vadd.f32 %v1199_v22, %v466_v58  ;;  %v530_v61 = vpop.f32.mrb[5].mxu1  ;;  %v1013_v62 = vpop.f32.mrb[6].mxu0 }
  0xf1   : > { %755 = vst.msk [vmem:[%s1211_s29 + $0x44] sm:$0xf] %vm737_vm3, %v969_v55  ;;  %v583_v63 = vmax.f32 %v475_v56, 0.0  ;;  %v531_v0 = vadd.f32 %v1199_v22, %v530_v61  ;;  %v478_v1 = vadd.f32 %v1013_v62, %v1199_v22  ;;  %v1029_v2 = vpop.f32.mrb[6].mxu1  ;;  %v469_v3 = vpop.f32.mrb[7].mxu0 }
  0xf2   : > { %v599_v4 = vmax.f32 %v539_v59, 0.0  ;;  %v581_v5 = vmax.f32 %v467_v60, 0.0  ;;  %v542_v6 = vadd.f32 %v1029_v2, %v1199_v22  ;;  %v470_v7 = vadd.f32 %v1199_v22, %v469_v3  ;;  %v533_v8 = vpop.f32.mrb[7].mxu1 }
  0xf3   : > { %v958_v9 = vpack.c.bf16 %v583_v63, %v583_v63  ;;  %v597_v10 = vmax.f32 %v531_v0, 0.0  ;;  %v584_v11 = vmax.f32 %v478_v1, 0.0  ;;  %v534_v12 = vadd.f32 %v1199_v22, %v533_v8 }
  0xf4   : > { %v974_v13 = vpack.c.bf16 %v599_v4, %v599_v4  ;;  %v956_v14 = vpack.c.bf16 %v581_v5, %v581_v5  ;;  %v600_v15 = vmax.f32 %v542_v6, 0.0  ;;  %v582_v16 = vmax.f32 %v470_v7, 0.0 }
  0xf5   : > { %744 = vst.msk [vmem:[%s1211_s29 + $0x18] sm:$0xf] %vm737_vm3, %v958_v9  ;;  %v972_v17 = vpack.c.bf16 %v597_v10, %v597_v10  ;;  %v959_v18 = vpack.c.bf16 %v584_v11, %v584_v11  ;;  %v598_v19 = vmax.f32 %v534_v12, 0.0 }
  0xf6   : > { %760 = vst.msk [vmem:[%s1211_s29 + $0x58] sm:$0xf] %vm737_vm3, %v974_v13  ;;  %742 = vst.msk [vmem:[%s1211_s29 + $0x10] sm:$0xf] %vm737_vm3, %v956_v14  ;;  %v975_v20 = vpack.c.bf16 %v600_v15, %v600_v15  ;;  %v957_v21 = vpack.c.bf16 %v582_v16, %v582_v16  ;;  %v1016_v23 = vpop.f32.mrb[8].mxu0 }
  0xf7   : > { %758 = vst.msk [vmem:[%s1211_s29 + $0x50] sm:$0xf] %vm737_vm3, %v972_v17  ;;  %745 = vst.msk [vmem:[%s1211_s29 + $0x1c] sm:$0xf] %vm737_vm3, %v959_v18  ;;  %v973_v24 = vpack.c.bf16 %v598_v19, %v598_v19  ;;  %v491_v25 = vadd.f32 %v1016_v23, %v1199_v22  ;;  %v1032_v26 = vpop.f32.mrb[8].mxu1  ;;  %v482_v27 = vpop.f32.mrb[9].mxu0 }
  0xf8   : > { %761 = vst.msk [vmem:[%s1211_s29 + $0x5c] sm:$0xf] %vm737_vm3, %v975_v20  ;;  %743 = vst.msk [vmem:[%s1211_s29 + $0x14] sm:$0xf] %vm737_vm3, %v957_v21  ;;  %v555_v28 = vadd.f32 %v1032_v26, %v1199_v22  ;;  %v483_v29 = vadd.f32 %v1199_v22, %v482_v27  ;;  %v546_v30 = vpop.f32.mrb[9].mxu1  ;;  %v1017_v31 = vpop.f32.mrb[10].mxu0 }
  0xf9   : > { %759 = vst.msk [vmem:[%s1211_s29 + $0x54] sm:$0xf] %vm737_vm3, %v973_v24  ;;  %v587_v32 = vmax.f32 %v491_v25, 0.0  ;;  %v547_v33 = vadd.f32 %v1199_v22, %v546_v30  ;;  %v494_v34 = vadd.f32 %v1017_v31, %v1199_v22  ;;  %v1033_v35 = vpop.f32.mrb[10].mxu1  ;;  %v485_v36 = vpop.f32.mrb[11].mxu0 }
  0xfa   : > { %v603_v37 = vmax.f32 %v555_v28, 0.0  ;;  %v585_v38 = vmax.f32 %v483_v29, 0.0  ;;  %v558_v39 = vadd.f32 %v1033_v35, %v1199_v22  ;;  %v486_v40 = vadd.f32 %v1199_v22, %v485_v36  ;;  %v549_v41 = vpop.f32.mrb[11].mxu1 }
  0xfb   : > { %v962_v42 = vpack.c.bf16 %v587_v32, %v587_v32  ;;  %v601_v43 = vmax.f32 %v547_v33, 0.0  ;;  %v588_v44 = vmax.f32 %v494_v34, 0.0  ;;  %v550_v45 = vadd.f32 %v1199_v22, %v549_v41 }
  0xfc   : > { %v978_v46 = vpack.c.bf16 %v603_v37, %v603_v37  ;;  %v960_v47 = vpack.c.bf16 %v585_v38, %v585_v38  ;;  %v604_v48 = vmax.f32 %v558_v39, 0.0  ;;  %v586_v49 = vmax.f32 %v486_v40, 0.0 }
  0xfd   : > { %748 = vst.msk [vmem:[%s1211_s29 + $0x28] sm:$0xf] %vm737_vm3, %v962_v42  ;;  %v976_v50 = vpack.c.bf16 %v601_v43, %v601_v43  ;;  %v963_v51 = vpack.c.bf16 %v588_v44, %v588_v44  ;;  %v602_v52 = vmax.f32 %v550_v45, 0.0 }
  0xfe   : > { %764 = vst.msk [vmem:[%s1211_s29 + $0x68] sm:$0xf] %vm737_vm3, %v978_v46  ;;  %746 = vst.msk [vmem:[%s1211_s29 + $0x20] sm:$0xf] %vm737_vm3, %v960_v47  ;;  %v979_v53 = vpack.c.bf16 %v604_v48, %v604_v48  ;;  %v961_v54 = vpack.c.bf16 %v586_v49, %v586_v49  ;;  %v1020_v55 = vpop.f32.mrb[12].mxu0 }
  0xff   : > { %762 = vst.msk [vmem:[%s1211_s29 + $0x60] sm:$0xf] %vm737_vm3, %v976_v50  ;;  %749 = vst.msk [vmem:[%s1211_s29 + $0x2c] sm:$0xf] %vm737_vm3, %v963_v51  ;;  %v977_v56 = vpack.c.bf16 %v602_v52, %v602_v52  ;;  %v507_v57 = vadd.f32 %v1020_v55, %v1199_v22  ;;  %v1036_v58 = vpop.f32.mrb[12].mxu1  ;;  %v498_v59 = vpop.f32.mrb[13].mxu0 }
 0x100   : > { %765 = vst.msk [vmem:[%s1211_s29 + $0x6c] sm:$0xf] %vm737_vm3, %v979_v53  ;;  %747 = vst.msk [vmem:[%s1211_s29 + $0x24] sm:$0xf] %vm737_vm3, %v961_v54  ;;  %v571_v60 = vadd.f32 %v1036_v58, %v1199_v22  ;;  %v499_v61 = vadd.f32 %v1199_v22, %v498_v59  ;;  %v562_v62 = vpop.f32.mrb[13].mxu1  ;;  %v1021_v63 = vpop.f32.mrb[14].mxu0 }
 0x101   : > { %763 = vst.msk [vmem:[%s1211_s29 + $0x64] sm:$0xf] %vm737_vm3, %v977_v56  ;;  %v591_v0 = vmax.f32 %v507_v57, 0.0  ;;  %v563_v1 = vadd.f32 %v1199_v22, %v562_v62  ;;  %v510_v2 = vadd.f32 %v1021_v63, %v1199_v22  ;;  %v1037_v3 = vpop.f32.mrb[14].mxu1  ;;  %v501_v4 = vpop.f32.mrb[15].mxu0 }
 0x102   : > { %v607_v5 = vmax.f32 %v571_v60, 0.0  ;;  %v589_v6 = vmax.f32 %v499_v61, 0.0  ;;  %v574_v7 = vadd.f32 %v1037_v3, %v1199_v22  ;;  %v502_v8 = vadd.f32 %v1199_v22, %v501_v4  ;;  %v565_v9 = vpop.f32.mrb[15].mxu1 }
 0x103   : > { %v966_v10 = vpack.c.bf16 %v591_v0, %v591_v0  ;;  %v605_v11 = vmax.f32 %v563_v1, 0.0  ;;  %v592_v12 = vmax.f32 %v510_v2, 0.0  ;;  %v566_v13 = vadd.f32 %v1199_v22, %v565_v9 }
 0x104   : > { %v982_v14 = vpack.c.bf16 %v607_v5, %v607_v5  ;;  %v964_v15 = vpack.c.bf16 %v589_v6, %v589_v6  ;;  %v608_v16 = vmax.f32 %v574_v7, 0.0  ;;  %v590_v17 = vmax.f32 %v502_v8, 0.0 }
 0x105   : > { %752 = vst.msk [vmem:[%s1211_s29 + $0x38] sm:$0xf] %vm737_vm3, %v966_v10  ;;  %v980_v18 = vpack.c.bf16 %v605_v11, %v605_v11  ;;  %v967_v19 = vpack.c.bf16 %v592_v12, %v592_v12  ;;  %v606_v20 = vmax.f32 %v566_v13, 0.0 }
 0x106   : > { %768 = vst.msk [vmem:[%s1211_s29 + $0x78] sm:$0xf] %vm737_vm3, %v982_v14  ;;  %750 = vst.msk [vmem:[%s1211_s29 + $0x30] sm:$0xf] %vm737_vm3, %v964_v15  ;;  %v983_v21 = vpack.c.bf16 %v608_v16, %v608_v16  ;;  %v965_v23 = vpack.c.bf16 %v590_v17, %v590_v17 }
 0x107   : > { %766 = vst.msk [vmem:[%s1211_s29 + $0x70] sm:$0xf] %vm737_vm3, %v980_v18  ;;  %753 = vst.msk [vmem:[%s1211_s29 + $0x3c] sm:$0xf] %vm737_vm3, %v967_v19  ;;  %v981_v22 = vpack.c.bf16 %v606_v20, %v606_v20 }
 0x108   : > { %769 = vst.msk [vmem:[%s1211_s29 + $0x7c] sm:$0xf] %vm737_vm3, %v983_v21  ;;  %751 = vst.msk [vmem:[%s1211_s29 + $0x34] sm:$0xf] %vm737_vm3, %v965_v23 }
 0x109   : > { %767 = vst.msk [vmem:[%s1211_s29 + $0x74] sm:$0xf] %vm737_vm3, %v981_v22 }
 0x10a PF: > { %s13_s14 = sadd.s32 1, %s1107_s14   ;;  %s1317_s12 = smov %s1103_s13 }
 0x10b   : > { %p10_p5 = scmp.ge.s32.totalorder %s13_s14, 13   ;;  %s1318_s13 = smov %s1320_s15 }
 0x10d   :  { %12 = sbr.rel (!%p10_p5) target bundleno = 2 (0x2), region = 68 }

</bundles_post_ra>
